<compile_context>
chip_gen: v5e
topology: v5e:2x2
jax: 0.10.0
libtpu: 0.0.40
codegen_flags: <defaults>
</compile_context>

<pallas_src>
import jax
import jax.numpy as jnp
from jax.experimental import pallas as pl
from jax.experimental.pallas import tpu as pltpu

_LANES = 512            # lane width per tile: multiple of 128 -> full-width vst
_MAX_BLOCK_ROWS = 1024  # rows per grid step (1024 x 512 x 4 B = 2 MiB f32/buffer)

# Sublane alignment by storage itemsize (packed sub-32-bit dtypes need more rows).
_SUBLANE_BY_ITEMSIZE = {4: 8, 2: 16, 1: 32}


def _sine_kernel(x_ref, o_ref):
    # Load in storage dtype, compute in f32 on the VPU/EUP, store back in
    # storage dtype.  Pure elementwise: no XLU / MXU work.
    x = x_ref[...].astype(jnp.float32)
    o_ref[...] = jnp.sin(30.0 * x).astype(o_ref.dtype)


def _choose_block_rows(rows, sublane):
    """Largest sublane-aligned block <= _MAX_BLOCK_ROWS, with >=2 grid steps
    whenever the tensor is big enough (feeds both TensorCores on v7x)."""
    if rows >= 2 * sublane:
        half = ((rows + 1) // 2 + sublane - 1) // sublane * sublane
        return min(_MAX_BLOCK_ROWS, half)
    return rows


def _run(x2d, block_rows):
    rows, lanes = x2d.shape
    grid = (pl.cdiv(rows, block_rows),)
    return pl.pallas_call(
        _sine_kernel,
        out_shape=jax.ShapeDtypeStruct((rows, lanes), x2d.dtype),
        grid_spec=pltpu.PrefetchScalarGridSpec(
            num_scalar_prefetch=0,
            grid=grid,
            in_specs=[pl.BlockSpec((block_rows, lanes), lambda i: (i, 0))],
            out_specs=pl.BlockSpec((block_rows, lanes), lambda i: (i, 0)),
        ),
        compiler_params=pltpu.CompilerParams(
            dimension_semantics=("parallel",),
        ),
    )(x2d)


@jax.jit
def sine(x):
    """Elementwise y = sin(30 * x) for arbitrary-shaped x (matches torch Sine)."""
    orig_shape = x.shape
    orig_dtype = x.dtype
    n = x.size

    # Keep the storage dtype through the kernel when it is a supported float;
    # otherwise fall back to f32 storage and cast back at the end.
    if orig_dtype in (jnp.dtype(jnp.float32), jnp.dtype(jnp.bfloat16),
                      jnp.dtype(jnp.float16)):
        store_dtype = orig_dtype
    else:
        store_dtype = jnp.dtype(jnp.float32)
    sublane = _SUBLANE_BY_ITEMSIZE.get(jnp.dtype(store_dtype).itemsize, 8)

    rows = max(pl.cdiv(n, _LANES), 1)

    # Static (trace-time) fast path: already lane/sublane aligned -> no pad,
    # no slice, pure reshape in/out of the kernel.
    if n % _LANES == 0 and rows % sublane == 0:
        x2d = x.reshape(rows, _LANES).astype(store_dtype)
        block_rows = _choose_block_rows(rows, sublane)
        y2d = _run(x2d, block_rows)
        return y2d.reshape(orig_shape).astype(orig_dtype)

    # Ragged path: pad only to the sublane-aligned row grid (no second round
    # of padding to a block_rows multiple; Pallas masks the partial last block).
    rows_pad = ((rows + sublane - 1) // sublane) * sublane
    padded_n = rows_pad * _LANES
    flat = x.reshape(-1).astype(store_dtype)
    flat = jnp.pad(flat, (0, padded_n - n))
    x2d = flat.reshape(rows_pad, _LANES)

    block_rows = _choose_block_rows(rows_pad, sublane)
    y2d = _run(x2d, block_rows)
    return y2d.reshape(-1)[:n].reshape(orig_shape).astype(orig_dtype)


if __name__ == "__main__":
    key = jax.random.PRNGKey(0)

    # Small 4-D activation consistent with Sine used as a decoder activation.
    x = jax.random.normal(key, (2, 4, 16, 16), jnp.float32)
    y = jax.block_until_ready(sine(x))
    y_ref = jnp.sin(30.0 * x)
    assert y.shape == x.shape and y.dtype == x.dtype
    assert jnp.allclose(y, y_ref, atol=1e-5, rtol=1e-5), "mismatch vs reference"

    # Aligned fast path (n % 512 == 0, rows % 8 == 0): no pad / slice.
    x1 = jax.random.normal(jax.random.PRNGKey(1), (8, 512), jnp.float32)
    y1 = jax.block_until_ready(sine(x1))
    assert jnp.allclose(y1, jnp.sin(30.0 * x1), atol=1e-5, rtol=1e-5), "aligned mismatch"

    # bf16 storage dtype: upcast/downcast inside the kernel, 16-row sublane tiles.
    xb = jax.random.normal(jax.random.PRNGKey(2), (4, 16, 32), jnp.bfloat16)
    yb = jax.block_until_ready(sine(xb))
    assert yb.dtype == jnp.bfloat16
    assert jnp.allclose(yb.astype(jnp.float32),
                        jnp.sin(30.0 * xb.astype(jnp.float32)),
                        atol=2e-2, rtol=2e-2), "bf16 mismatch"

    # Ragged shape that doesn't divide the tile grid (pad + slice path).
    x2 = jax.random.normal(jax.random.PRNGKey(3), (3, 5, 7), jnp.float32)
    y2 = jax.block_until_ready(sine(x2))
    assert jnp.allclose(y2, jnp.sin(30.0 * x2), atol=1e-5, rtol=1e-5), "ragged mismatch"

    print("KERNEL_OK")
</pallas_src>

<mosaic_0001>
module attributes {stable_mosaic.version = 11 : i64} {
  func.func @_sine_kernel(%arg0: i32, %arg1: memref<8x512xf32, #tpu.memory_space<vmem>>, %arg2: memref<8x512xf32, #tpu.memory_space<vmem>>) attributes {dimension_semantics = [#tpu.dimension_semantics<parallel>], iteration_bounds = array<i64: 1>, scalar_prefetch = 0 : i64, scratch_operands = 0 : i64, tpu.core_type = #tpu.core_type<tc>, window_params = [{transform_indices = @transform_0, window_bounds = array<i64: 8, 512>}, {transform_indices = @transform_1, window_bounds = array<i64: 8, 512>}]} {
    %c0 = arith.constant 0 : index
    %c0_0 = arith.constant 0 : index
    %0 = vector.load %arg1[%c0, %c0_0] : memref<8x512xf32, #tpu.memory_space<vmem>>, vector<8x512xf32>
    %cst = arith.constant 3.000000e+01 : f32
    %1 = vector.broadcast %cst : f32 to vector<8x512xf32>
    %2 = arith.mulf %1, %0 : vector<8x512xf32>
    %3 = math.sin %2 : vector<8x512xf32>
    %c0_1 = arith.constant 0 : index
    %c0_2 = arith.constant 0 : index
    %4 = vector.load %arg2[%c0_1, %c0_2] : memref<8x512xf32, #tpu.memory_space<vmem>>, vector<8x512xf32>
    tpu.vector_store %arg2[%c0_1, %c0_2], %3 {strides = array<i32>} : memref<8x512xf32, #tpu.memory_space<vmem>>, vector<8x512xf32>,
    return
  }
  func.func @transform_0(%arg0: i32) -> (i32, i32) {
    %c0_i32 = arith.constant 0 : i32
    %c0_i32_0 = arith.constant 0 : i32
    return %arg0, %c0_i32 : i32, i32
  }
  func.func @transform_1(%arg0: i32) -> (i32, i32) {
    %c0_i32 = arith.constant 0 : i32
    %c0_i32_0 = arith.constant 0 : i32
    return %arg0, %c0_i32 : i32, i32
  }
}

</mosaic_0001>

<bundles_post_ra>
// kernel: sine.1
= control target key start
LH: loop header
LB: loop body
LE: loop exit
PB: predicated region body
PF: predicated region fallthrough
CT: control target
= control target key end

     0   :  { %v663_v31 = vmov 683565275   ;;  %v664_v33 = vmov 2475754826   ;;  %v665_v35 = vmov 2131351028   ;;  %s1115_s0 = inlined_call_operand.vmem [shape: f32[8,512], index: 0, kind: input, shape index: {}]   ;;  %s1116_s1 = inlined_call_operand.vmem [shape: f32[8,512], index: 1, kind: output, shape index: {}]  }
   0x1   :  { %v8_v0 = vld [vmem:[%s1115_s0] sm:$0xff]  ;;  %v9_v1 = vld [vmem:[%s1115_s0 + $0x8] sm:$0xff]  ;;  %v10_v2 = vld [vmem:[%s1115_s0 + $0x10] sm:$0xff]  ;;  %v666_v37 = vmov 2102212464  }
   0x2   :  { %v689_v3 = vmul.f32 30.0, %v8_v0  ;;  %v691_v4 = vmul.f32 30.0, %v9_v1  ;;  %v693_v5 = vmul.f32 30.0, %v10_v2  ;;  %v667_v39 = vmov 920167782  }
   0x3   :  { %v668_v48 = vmov 1326507024  }
   0x4   :  { %v16_v6 = vand.u32 2147483647, %v689_v3  ;;  %v19_v7 = vand.u32 2139095040, %v689_v3  ;;  %v171_v8 = vand.u32 2147483647, %v691_v4  ;;  %v174_v9 = vand.u32 2139095040, %v691_v4 }
   0x5   :  { %v329_v10 = vand.u32 2139095040, %v693_v5 }
   0x6   :  { %v20_v11 = vshrl.u32 %v19_v7, 23  ;;  %v23_v12 = vand.u32 8388607, %v16_v6  ;;  %v175_v13 = vshrl.u32 %v174_v9, 23  ;;  %v178_v14 = vand.u32 8388607, %v171_v8 }
   0x7   :  { %v330_v18 = vshrl.u32 %v329_v10, 23 }
   0x8   :  { %v644_v15 = vadd.s32 4294967169, %v20_v11  ;;  %v24_v16 = vor.u32 8388608, %v23_v12  ;;  %v647_v17 = vadd.s32 4294967169, %v175_v13  ;;  %v179_v20 = vor.u32 8388608, %v178_v14 }
   0x9   :  { %v650_v24 = vadd.s32 4294967169, %v330_v18 }
   0xa   :  { %v26_v19 = vadd.s32 1, %v644_v15  ;;  %v181_v21 = vadd.s32 1, %v647_v17  ;;  %v704_v23 = vshll.u32 %v24_v16, 8  ;;  %v710_v29 = vshll.u32 %v179_v20, 8 }
   0xb   :  { %v718_v42 = vadd.s32 1, %v650_v24 }
   0xc   :  { %vm27_vm0 = vcmp.gt.s32.totalorder %v26_v19, 0  ;;  %vm182_vm1 = vcmp.gt.s32.totalorder %v181_v21, 0  ;;  %v65_v41 = vand.u32 65535, %v704_v23  ;;  %v66_v46 = vshrl.u32 %v704_v23, 16 }
   0xd   :  { %v28_v22 = vsel %vm27_vm0, %v26_v19, 0  ;;  %v183_v26 = vsel %vm182_vm1, %v181_v21, 0  ;;  %vm337_vm15 = vcmp.gt.s32.totalorder %v718_v42, 0 }
   0xe   :  { %v30_v25 = vand.u32 31, %v28_v22  ;;  %v706_v27 = vshrl.u32 %v28_v22, 5  ;;  %v708_v28 = vand.u32 31, %v183_v26  ;;  %v738_v59 = vshrl.u32 %v183_v26, 5 }
  0x10   :  { %v31_v30 = vsub.s32 32, %v30_v25  ;;  %v33_v32 = vshll.u32 %v663_v31, %v30_v25  ;;  %v36_v34 = vshll.u32 %v664_v33, %v30_v25  ;;  %v39_v36 = vshll.u32 %v665_v35, %v30_v25 }
  0x11   :  { %v42_v38 = vshll.u32 %v666_v37, %v30_v25  ;;  %v45_v40 = vshll.u32 %v667_v39, %v30_v25  ;;  %vm48_vm2 = vcmp.lt.s32.totalorder %v706_v27, 1  ;;  %vm51_vm3 = vcmp.lt.s32.totalorder %v706_v27, 4 }
  0x12   :  { %v34_v43 = vshrl.u32 %v664_v33, %v31_v30  ;;  %v37_v44 = vshrl.u32 %v665_v35, %v31_v30  ;;  %v40_v45 = vshrl.u32 %v666_v37, %v31_v30  ;;  %v43_v47 = vshrl.u32 %v667_v39, %v31_v30 }
  0x13   :  { %v46_v49 = vshrl.u32 %v668_v48, %v31_v30  ;;  %v729_v53 = vsub.s32 32, %v708_v28  ;;  %v32_v54 = vshrl.u32 %v663_v31, %v31_v30  ;;  %vm50_vm4 = vcmp.lt.s32.totalorder %v706_v27, 3 }
  0x14   :  { %v35_v50 = vor.u32 %v34_v43, %v33_v32  ;;  %v38_v51 = vor.u32 %v37_v44, %v36_v34  ;;  %v41_v52 = vor.u32 %v40_v45, %v39_v36  ;;  %v44_v55 = vor.u32 %v43_v47, %v42_v38 }
  0x15   :  { %v47_v56 = vor.u32 %v46_v49, %v45_v40  ;;  %vm49_vm5 = vcmp.lt.s32.totalorder %v706_v27, 2  ;;  %v188_v62 = vshll.u32 %v663_v31, %v708_v28  ;;  %v191_v63 = vshll.u32 %v664_v33, %v708_v28 }
  0x16   :  { %v56_v57 = vsel %vm48_vm2, %v35_v50, %v38_v51  ;;  %v60_v58 = vsel %vm48_vm2, %v38_v51, %v41_v52  ;;  %v57_v60 = vsel %vm51_vm3, %v44_v55, 920167782  ;;  %v53_v0 = vsel %vm51_vm3, %v41_v52, 2102212464 }
  0x17   :  { %v61_v61 = vsel %vm51_vm3, %v47_v56, 1326507024  ;;  %v58_v1 = vsel %vm50_vm4, %v41_v52, %v57_v60  ;;  %v189_v7 = vshrl.u32 %v664_v33, %v729_v53  ;;  %v52_v9 = vsel %vm48_vm2, %v32_v54, %v35_v50 }
  0x18   :  { %v62_v2 = vsel %vm50_vm4, %v44_v55, %v61_v61  ;;  %v59_v10 = vsel %vm49_vm5, %v56_v57, %v58_v1  ;;  %v192_v12 = vshrl.u32 %v665_v35, %v729_v53  ;;  %v54_v17 = vsel %vm50_vm4, %v38_v51, %v53_v0 }
  0x19   :  { %v63_v11 = vsel %vm49_vm5, %v60_v58, %v62_v2  ;;  %v89_v15 = vand.u32 65535, %v59_v10  ;;  %v90_v16 = vshrl.u32 %v59_v10, 16  ;;  %v766_v18 = vor.u32 %v189_v7, %v188_v62 }
  0x1a   :  { %v67_v13 = vand.u32 65535, %v63_v11  ;;  %v68_v14 = vshrl.u32 %v63_v11, 16  ;;  %v768_v19 = vor.u32 %v192_v12, %v191_v63  ;;  %v194_v20 = vshll.u32 %v665_v35, %v708_v28 }
  0x1b   :  { %v195_v25 = vshrl.u32 %v666_v37, %v729_v53  ;;  %v91_v30 = vmul.u32 %v89_v15, %v65_v41  ;;  %v92_v32 = vmul.u32 %v90_v16, %v65_v41  ;;  %v93_v34 = vmul.u32 %v89_v15, %v66_v46 }
  0x1c   :  { %v69_v21 = vmul.u32 %v67_v13, %v65_v41  ;;  %v70_v22 = vmul.u32 %v68_v14, %v65_v41  ;;  %v71_v24 = vmul.u32 %v67_v13, %v66_v46  ;;  %v72_v26 = vmul.u32 %v68_v14, %v66_v46 }
  0x1d   :  { %v94_v43 = vmul.u32 %v90_v16, %v66_v46  ;;  %v95_v45 = vshll.u32 %v92_v32, 16  ;;  %v96_v47 = vshrl.u32 %v92_v32, 16  ;;  %v97_v49 = vshll.u32 %v93_v34, 16 }
  0x1e   :  { %v73_v36 = vshll.u32 %v70_v22, 16  ;;  %v74_v38 = vshrl.u32 %v70_v22, 16  ;;  %v75_v40 = vshll.u32 %v71_v24, 16  ;;  %v76_v44 = vshrl.u32 %v71_v24, 16 }
  0x1f   :  { %v98_v51 = vshrl.u32 %v93_v34, 16  ;;  %v197_v52 = vshll.u32 %v666_v37, %v708_v28  ;;  %v669_v54 = vmov 0   ;;  %vm99_vm7 = vc.u32 %v91_v30, %v95_v45 }
  0x20   :  { %vm77_vm6 = vc.u32 %v69_v21, %v73_v36  ;;  %v79_v50 = vadd.s32 %v73_v36, %v69_v21  ;;  %v101_v41 = vadd.s32 %v95_v45, %v91_v30  ;;  %v198_v56 = vshrl.u32 %v667_v39, %v729_v53 }
  0x21   :  { %v78_v55 = vsel %vm77_vm6, 1, %v669_v54  ;;  %v100_v46 = vsel %vm99_vm7, 1, %v669_v54  ;;  %v200_v58 = vshll.u32 %v667_v39, %v708_v28  ;;  %v196_v62 = vor.u32 %v195_v25, %v194_v20 }
  0x22   :  { %v80_v57 = vadd.s32 %v78_v55, %v72_v26  ;;  %vm81_vm8 = vc.u32 %v79_v50, %v75_v40  ;;  %v102_v61 = vadd.s32 %v100_v46, %v94_v43  ;;  %vm103_vm9 = vc.u32 %v101_v41, %v97_v49 }
  0x23   :  { %v82_v60 = vsel %vm81_vm8, 1, %v669_v54  ;;  %v104_v0 = vsel %vm103_vm9, 1, %v669_v54  ;;  %v199_v1 = vor.u32 %v198_v56, %v197_v52  ;;  %v201_v2 = vshrl.u32 %v668_v48, %v729_v53 }
  0x24   :  { %v84_v63 = vadd.s32 %v82_v60, %v80_v57  ;;  %v786_v7 = vadd.s32 %v101_v41, %v97_v49  ;;  %v106_v10 = vadd.s32 %v104_v0, %v102_v61  ;;  %vm203_vm10 = vcmp.lt.s32.totalorder %v738_v59, 1 }
  0x25   :  { %vm205_vm11 = vcmp.lt.s32.totalorder %v738_v59, 3  ;;  %v202_v11 = vor.u32 %v201_v2, %v200_v58  ;;  %vm204_vm12 = vcmp.lt.s32.totalorder %v738_v59, 2  ;;  %vm206_vm13 = vcmp.lt.s32.totalorder %v738_v59, 4 }
  0x26   :  { %v85_v28 = vadd.s32 %v84_v63, %v74_v38  ;;  %v55_v12 = vsel %vm49_vm5, %v52_v9, %v54_v17  ;;  %v107_v13 = vadd.s32 %v106_v10, %v96_v47  ;;  %v211_v14 = vsel %vm203_vm10, %v766_v18, %v768_v19 }
  0x27   :  { %v212_v15 = vsel %vm206_vm13, %v199_v1, 920167782  ;;  %v215_v21 = vsel %vm203_vm10, %v768_v19, %v196_v62  ;;  %v220_v27 = vand.u32 65535, %v710_v29  ;;  %v216_v22 = vsel %vm206_vm13, %v202_v11, 1326507024 }
  0x28   :  { %v800_v16 = vadd.s32 %v85_v28, %v76_v44  ;;  %v213_v20 = vsel %vm205_vm11, %v196_v62, %v212_v15  ;;  %v108_v9 = vadd.s32 %v107_v13, %v98_v51  ;;  %v221_v24 = vshrl.u32 %v710_v29, 16 }
  0x29   :  { %v214_v17 = vsel %vm204_vm12, %v211_v14, %v213_v20  ;;  %v109_v25 = vmul.u32 %v704_v23, %v55_v12  ;;  %v217_v26 = vsel %vm205_vm11, %v199_v1, %v216_v22  ;;  %v187_v38 = vshrl.u32 %v663_v31, %v729_v53 }
  0x2a   :  { %vm111_vm14 = vc.u32 %v800_v16, %v786_v7  ;;  %v244_v30 = vand.u32 65535, %v214_v17  ;;  %v112_v32 = vadd.s32 1, %v108_v9  ;;  %v218_v34 = vsel %vm204_vm12, %v215_v21, %v217_v26 }
  0x2b   :  { %v245_v36 = vshrl.u32 %v214_v17, 16  ;;  %v222_v40 = vand.u32 65535, %v218_v34  ;;  %v223_v43 = vshrl.u32 %v218_v34, 16  ;;  %v208_v44 = vsel %vm206_vm13, %v196_v62, 2102212464 }
  0x2c   :  { %v113_v23 = vsel %vm111_vm14, %v112_v32, %v108_v9  ;;  %v248_v47 = vmul.u32 %v244_v30, %v221_v24  ;;  %v246_v52 = vmul.u32 %v244_v30, %v220_v27  ;;  %v338_v56 = vsel %vm337_vm15, %v718_v42, 0 }
  0x2d   :  { %v247_v45 = vmul.u32 %v245_v36, %v220_v27  ;;  %v114_v49 = vadd.s32 %v113_v23, %v109_v25  ;;  %v224_v50 = vmul.u32 %v222_v40, %v220_v27  ;;  %v225_v51 = vmul.u32 %v223_v43, %v220_v27 }
  0x2e   :  { %v226_v55 = vmul.u32 %v222_v40, %v221_v24  ;;  %v207_v53 = vsel %vm203_vm10, %v187_v38, %v766_v18  ;;  %v227_v46 = vmul.u32 %v223_v43, %v221_v24  ;;  %v209_v60 = vsel %vm205_vm11, %v768_v19, %v208_v44 }
  0x2f   :  { %v250_v41 = vshll.u32 %v247_v45, 16  ;;  %v115_v57 = vadd.s32 536870912, %v114_v49  ;;  %v228_v58 = vshll.u32 %v225_v51, 16  ;;  %v249_v62 = vmul.u32 %v245_v36, %v221_v24 }
  0x30   :  { %v230_v61 = vshll.u32 %v226_v55, 16  ;;  %v252_v63 = vshll.u32 %v248_v47, 16  ;;  %v229_v42 = vshrl.u32 %v225_v51, 16  ;;  %v251_v12 = vshrl.u32 %v247_v45, 16 }
  0x31   :  { %v832_v0 = vshrl.u32 %v115_v57, 30  ;;  %vm232_vm0 = vc.u32 %v224_v50, %v228_v58  ;;  %v234_v1 = vadd.s32 %v228_v58, %v224_v50  ;;  %vm254_vm1 = vc.u32 %v246_v52, %v250_v41 }
  0x32   :  { %v233_v2 = vsel %vm232_vm0, 1, %v669_v54  ;;  %v255_v10 = vsel %vm254_vm1, 1, %v669_v54  ;;  %v256_v18 = vadd.s32 %v250_v41, %v246_v52  ;;  %v340_v14 = vand.u32 31, %v338_v56 }
  0x33   :  { %v117_v28 = vshll.u32 %v832_v0, 30  ;;  %v235_v11 = vadd.s32 %v233_v2, %v227_v46  ;;  %vm236_vm2 = vc.u32 %v234_v1, %v230_v61  ;;  %v257_v13 = vadd.s32 %v255_v10, %v249_v62 }
  0x34   :  { %v237_v19 = vsel %vm236_vm2, 1, %v669_v54  ;;  %vm258_vm3 = vc.u32 %v256_v18, %v252_v63  ;;  %v231_v20 = vshrl.u32 %v226_v55, 16  ;;  %v253_v9 = vshrl.u32 %v248_v47, 16 }
  0x35   :  { %v118_v15 = vsub.s32 %v114_v49, %v117_v28  ;;  %v239_v21 = vadd.s32 %v237_v19, %v235_v11  ;;  %v259_v27 = vsel %vm258_vm3, 1, %v669_v54  ;;  %v326_v22 = vand.u32 2147483647, %v693_v5 }
  0x36   :  { %v261_v17 = vadd.s32 %v259_v27, %v257_v13  ;;  %v840_v26 = vadd.s32 %v256_v18, %v252_v63  ;;  %v210_v30 = vsel %vm204_vm12, %v207_v53, %v209_v60  ;;  %v341_v34 = vsub.s32 32, %v340_v14 }
  0x37   :  { %vm119_vm4 = vcmp.lt.s32.totalorder %v118_v15, 0  ;;  %v120_v24 = vsub.s32 0, %v118_v15  ;;  %v240_v25 = vadd.s32 %v239_v21, %v229_v42  ;;  %vm18_vm5 = vcmp.lt.s32.totalorder %v689_v3, 0 }
  0x38   :  { %v262_v32 = vadd.s32 %v261_v17, %v251_v12  ;;  %v110_v40 = vadd.s32 %v786_v7, %v800_v16  ;;  %v333_v44 = vand.u32 8388607, %v326_v22  ;;  %v140_v45 = vsub.s32 4, %v832_v0 }
  0x39   :  { %v121_v36 = vsel %vm119_vm4, %v120_v24, %v118_v15  ;;  %v845_v38 = vadd.s32 %v240_v25, %v231_v20  ;;  %v264_v59 = vmul.u32 %v710_v29, %v210_v30  ;;  %v855_v47 = vshrl.u32 %v338_v56, 5 }
  0x3a   :  { %v122_v43 = vclz %v121_v36  ;;  %v263_v23 = vadd.s32 %v262_v32, %v253_v9  ;;  %vm859_vm7 = vcmp.le.f32.partialorder %v16_v6, 0.7853982  ;;  %v352_v50 = vshll.u32 %v666_v37, %v340_v14 }
  0x3b   :  { %vm266_vm6 = vc.u32 %v845_v38, %v840_v26  ;;  %v353_v51 = vshrl.u32 %v667_v39, %v341_v34  ;;  %v343_v52 = vshll.u32 %v663_v31, %v340_v14  ;;  %v344_v29 = vshrl.u32 %v664_v33, %v341_v34 }
  0x3c   :  { %v645_v7 = vadd.s32 4294967294, %v122_v43  ;;  %v267_v16 = vadd.s32 1, %v263_v23  ;;  %v346_v55 = vshll.u32 %v664_v33, %v340_v14  ;;  %v347_v41 = vshrl.u32 %v665_v35, %v341_v34  ;;  %v11_v43 = vld [vmem:[%s1115_s0 + $0x18] sm:$0xff] }
  0x3d   :  { %v349_v6 = vshll.u32 %v665_v35, %v340_v14  ;;  %v350_v57 = vshrl.u32 %v666_v37, %v341_v34  ;;  %v355_v58 = vshll.u32 %v667_v39, %v340_v14  ;;  %v356_v60 = vshrl.u32 %v668_v48, %v341_v34 }
  0x3e   :  { %vm646_vm8 = vcmp.lt.s32.totalorder %v645_v7, 0  ;;  %v268_v56 = vsel %vm266_vm6, %v267_v16, %v263_v23  ;;  %v354_v1 = vor.u32 %v353_v51, %v352_v50  ;;  %v141_v42 = vsel %vm18_vm5, %v140_v45, %v832_v0 }
  0x3f   :  { %v125_v53 = vsel %vm646_vm8, 0, %v645_v7  ;;  %v269_v46 = vadd.s32 %v268_v56, %v264_v59  ;;  %v345_v10 = vor.u32 %v344_v29, %v343_v52  ;;  %v876_v18 = vor.u32 %v347_v41, %v346_v55 }
  0x40   :  { %v126_v61 = vsub.s32 32, %v125_v53  ;;  %v127_v62 = vshll.u32 %v118_v15, %v125_v53  ;;  %v130_v63 = vsub.s32 4294967266, %v125_v53  ;;  %v351_v12 = vor.u32 %v350_v57, %v349_v6 }
  0x41   :  { %v270_v2 = vadd.s32 536870912, %v269_v46  ;;  %vm358_vm9 = vcmp.lt.s32.totalorder %v855_v47, 1  ;;  %v357_v13 = vor.u32 %v356_v60, %v355_v58  ;;  %vm360_vm10 = vcmp.lt.s32.totalorder %v855_v47, 3 }
  0x42   :  { %v128_v28 = vshrl.u32 %v110_v40, %v126_v61  ;;  %v131_v11 = vadd.s32 127, %v130_v63  ;;  %vm361_vm11 = vcmp.lt.s32.totalorder %v855_v47, 4  ;;  %v334_v20 = vor.u32 8388608, %v333_v44 }
  0x43   :  { %v879_v19 = vshrl.u32 %v270_v2, 30  ;;  %v367_v0 = vsel %vm361_vm11, %v354_v1, 920167782  ;;  %v143_v21 = vsel %vm859_vm7, 0, %v141_v42  ;;  %vm359_vm12 = vcmp.lt.s32.totalorder %v855_v47, 2 }
  0x44   :  { %v129_v14 = vor.u32 %v128_v28, %v127_v62  ;;  %v132_v15 = vshll.u32 %v131_v11, 23  ;;  %v366_v24 = vsel %vm358_vm9, %v345_v10, %v876_v18  ;;  %v368_v25 = vsel %vm360_vm10, %v351_v12, %v367_v0 }
  0x45   :  { %v272_v27 = vshll.u32 %v879_v19, 30  ;;  %v342_v32 = vshrl.u32 %v663_v31, %v341_v34  ;;  %v370_v36 = vsel %vm358_vm9, %v876_v18, %v351_v12  ;;  %v371_v40 = vsel %vm361_vm11, %v357_v13, 1326507024 }
  0x46   :  { %v133_v9 = vor.u32 4788187, %v132_v15  ;;  %v136_v17 = vcvt.s32.f32 %v129_v14  ;;  %v160_v44 = vadd.s32 3, %v143_v21  ;;  %v372_v45 = vsel %vm360_vm10, %v354_v1, %v371_v40 }
  0x47   :  { %v894_v30 = vsub.s32 %v269_v46, %v272_v27  ;;  %v907_v59 = vshll.u32 %v334_v20, 8  ;;  %v369_v7 = vsel %vm359_vm12, %v366_v24, %v368_v25  ;;  %v373_v16 = vsel %vm359_vm12, %v370_v36, %v372_v45 }
  0x48   :  { %v134_v23 = vand.u32 2147483647, %v133_v9  ;;  %v377_v29 = vand.u32 65535, %v373_v16  ;;  %v917_v55 = vmul.f32 30.0, %v11_v43  ;;  %v378_v56 = vshrl.u32 %v373_v16, 16 }
  0x49   :  { %vm274_vm13 = vcmp.lt.s32.totalorder %v894_v30, 0  ;;  %v275_v34 = vsub.s32 0, %v894_v30  ;;  %v375_v51 = vand.u32 65535, %v907_v59  ;;  %v376_v52 = vshrl.u32 %v907_v59, 16 }
  0x4a   :  { %v137_v50 = vmul.f32 %v136_v17, %v134_v23  ;;  %v265_v57 = vadd.s32 %v840_v26, %v845_v38  ;;  %v924_v58 = vand.u32 3, %v160_v44  ;;  %v400_v62 = vshrl.u32 %v369_v7, 16 }
  0x4b   :  { %v276_v41 = vsel %vm274_vm13, %v275_v34, %v894_v30  ;;  %v922_v46 = vmul.u32 %v377_v29, %v376_v52  ;;  %v379_v60 = vmul.u32 %v377_v29, %v375_v51  ;;  %v380_v61 = vmul.u32 %v378_v56, %v375_v51 }
  0x4c   :  { %v138_v6 = vxor.u32 2147483648, %v137_v50  ;;  %v277_v53 = vclz %v276_v41  ;;  %v362_v42 = vsel %vm358_vm9, %v342_v32, %v345_v10  ;;  %v363_v2 = vsel %vm361_vm11, %v351_v12, 2102212464 }
  0x4d   :  { %v383_v38 = vshll.u32 %v380_v61, 16  ;;  %v385_v28 = vshll.u32 %v922_v46, 16  ;;  %v399_v11 = vand.u32 65535, %v369_v7  ;;  %vm173_vm14 = vcmp.lt.s32.totalorder %v691_v4, 0 }
  0x4e   :  { %v139_v63 = vsel %vm18_vm5, %v138_v6, %v137_v50  ;;  %v648_v1 = vadd.s32 4294967294, %v277_v53  ;;  %v295_v10 = vsub.s32 4, %v879_v19  ;;  %v382_v14 = vmul.u32 %v378_v56, %v376_v52 }
  0x4f   :  { %v935_v26 = vsel %vm859_vm7, %v689_v3, %v139_v63  ;;  %vm387_vm0 = vc.u32 %v379_v60, %v383_v38  ;;  %v389_v12 = vadd.s32 %v383_v38, %v379_v60  ;;  %v942_v20 = vmul.u32 %v400_v62, %v375_v51 }
  0x50   :  { %v144_v13 = vmul.f32 %v935_v26, %v935_v26  ;;  %vm649_vm15 = vcmp.lt.s32.totalorder %v648_v1, 0  ;;  %v388_v17 = vsel %vm387_vm0, 1, %v669_v54  ;;  %v946_v24 = vmul.u32 %v399_v11, %v376_v52 }
  0x51   :  { %v280_v15 = vsel %vm649_vm15, 0, %v648_v1  ;;  %vm391_vm1 = vc.u32 %v389_v12, %v385_v28  ;;  %vm950_vm2 = vcmp.le.f32.partialorder %v171_v8, 0.7853982  ;;  %v390_v43 = vadd.s32 %v388_v17, %v382_v14 }
  0x52   :  { %v145_v49 = vmul.f32 -0.001358992, %v144_v13  ;;  %v152_v0 = vmul.f32 -0.00019511016, %v144_v13  ;;  %v281_v21 = vsub.s32 32, %v280_v15  ;;  %v282_v27 = vshll.u32 %v894_v30, %v280_v15 }
  0x53   :  { %v285_v9 = vsub.s32 4294967266, %v280_v15  ;;  %vm166_vm3 = vcmp.eq.s32.totalorder %v924_v58, 2  ;;  %v364_v30 = vsel %vm360_vm10, %v876_v18, %v363_v2  ;;  %v384_v44 = vshrl.u32 %v380_v61, 16 }
  0x54   :  { %v146_v25 = vadd.f32 0.041655596, %v145_v49  ;;  %v153_v32 = vadd.f32 0.008332121, %v152_v0  ;;  %v283_v40 = vshrl.u32 %v265_v57, %v281_v21  ;;  %v401_v45 = vmul.u32 %v399_v11, %v375_v51 }
  0x55   :  { %v286_v23 = vadd.s32 127, %v285_v9  ;;  %v392_v50 = vsel %vm391_vm1, 1, %v669_v54  ;;  %vm163_vm4 = vcmp.eq.s32.totalorder %v924_v58, 0  ;;  %v404_v41 = vmul.u32 %v400_v62, %v376_v52 }
  0x56   :  { %v147_v34 = vmul.f32 %v146_v25, %v144_v13  ;;  %v154_v7 = vmul.f32 %v153_v32, %v144_v13  ;;  %v284_v16 = vor.u32 %v283_v40, %v282_v27  ;;  %v394_v29 = vadd.s32 %v392_v50, %v390_v43 }
  0x57   :  { %v287_v8 = vshll.u32 %v286_v23, 23  ;;  %v405_v56 = vshll.u32 %v942_v20, 16  ;;  %v365_v53 = vsel %vm359_vm12, %v362_v42, %v364_v30  ;;  %v407_v18 = vshll.u32 %v946_v24, 16 }
  0x58   :  { %v148_v6 = vadd.f32 -0.4999988, %v147_v34  ;;  %v155_v57 = vadd.f32 -0.16666654, %v154_v7  ;;  %v291_v60 = vcvt.s32.f32 %v284_v16  ;;  %v296_v61 = vsel %vm173_vm14, %v295_v10, %v879_v19 }
  0x59   :  { %v288_v51 = vor.u32 4788187, %v287_v8  ;;  %vm409_vm5 = vc.u32 %v401_v45, %v405_v56  ;;  %v411_v62 = vadd.s32 %v405_v56, %v401_v45  ;;  %v386_v38 = vshrl.u32 %v922_v46, 16 }
  0x5a   :  { %v149_v63 = vmul.f32 %v148_v6, %v144_v13  ;;  %v156_v1 = vmul.f32 %v155_v57, %v144_v13  ;;  %v410_v52 = vsel %vm409_vm5, 1, %v669_v54  ;;  %v395_v28 = vadd.s32 %v394_v29, %v384_v44 }
  0x5b   :  { %v289_v2 = vand.u32 2147483647, %v288_v51  ;;  %v412_v47 = vadd.s32 %v410_v52, %v404_v41  ;;  %v406_v14 = vshrl.u32 %v942_v20, 16  ;;  %vm413_vm6 = vc.u32 %v411_v62, %v407_v18 }
  0x5c   :  { %v150_v42 = vadd.f32 1.0, %v149_v63  ;;  %v157_v11 = vadd.f32 1.0, %v156_v1  ;;  %v298_v19 = vsel %vm950_vm2, 0, %v296_v61  ;;  %v414_v10 = vsel %vm413_vm6, 1, %v669_v54 }
  0x5d   :  { %v292_v15 = vmul.f32 %v291_v60, %v289_v2  ;;  %v484_v13 = vand.u32 2139095040, %v917_v55  ;;  %v408_v46 = vshrl.u32 %v946_v24, 16  ;;  %v416_v0 = vadd.s32 %v414_v10, %v412_v47 }
  0x5e   :  { %v158_v12 = vmul.f32 %v157_v11, %v935_v26  ;;  %v167_v49 = vxor.u32 2147483648, %v150_v42  ;;  %v976_v27 = vadd.s32 %v395_v28, %v386_v38  ;;  %v978_v9 = vadd.s32 %v411_v62, %v407_v18 }
  0x5f   :  { %v293_v21 = vxor.u32 2147483648, %v292_v15  ;;  %v485_v20 = vshrl.u32 %v484_v13, 23  ;;  %vm162_vm7 = vcmp.lt.s32.totalorder %v924_v58, 2  ;;  %v417_v32 = vadd.s32 %v416_v0, %v406_v14 }
  0x60   :  { %v164_v17 = vxor.u32 2147483648, %v158_v12  ;;  %v168_v25 = vsel %vm166_vm3, %v167_v49, %v158_v12  ;;  %vm159_vm8 = vweird.f32 %v689_v3  ;;  %v419_v24 = vmul.u32 %v907_v59, %v365_v53 }
  0x61   :  { %v294_v26 = vsel %vm173_vm14, %v293_v21, %v292_v15  ;;  %v653_v40 = vadd.s32 4294967169, %v485_v20  ;;  %v315_v30 = vadd.s32 3, %v298_v19  ;;  %v418_v44 = vadd.s32 %v417_v32, %v408_v46 }
  0x62   :  { %v165_v43 = vsel %vm163_vm4, %v150_v42, %v164_v17  ;;  %v297_v23 = vsel %vm950_vm2, %v691_v4, %v294_v26  ;;  %vm421_vm9 = vc.u32 %v976_v27, %v978_v9  ;;  %v481_v59 = vand.u32 2147483647, %v917_v55 }
  0x63   :  { %v169_v45 = vsel %vm162_vm7, %v165_v43, %v168_v25  ;;  %v299_v34 = vmul.f32 %v297_v23, %v297_v23  ;;  %v491_v3 = vadd.s32 1, %v653_v40  ;;  %v422_v16 = vadd.s32 1, %v418_v44 }
  0x64   :  { %v170_v7 = vsel %vm159_vm8, nan, %v169_v45  ;;  %v316_v56 = vand.u32 3, %v315_v30  ;;  %v488_v60 = vand.u32 8388607, %v481_v59  ;;  %vm314_vm12 = vweird.f32 %v691_v4 }
  0x65   :  { %v300_v50 = vmul.f32 -0.001358992, %v299_v34  ;;  %v307_v8 = vmul.f32 -0.00019511016, %v299_v34  ;;  %vm492_vm10 = vcmp.gt.s32.totalorder %v491_v3, 0  ;;  %636 = vst [vmem:[%s1116_s1] sm:$0xff] %v170_v7  ;;  %v423_v58 = vsel %vm421_vm9, %v422_v16, %v418_v44 }
  0x66   :  { %v493_v36 = vsel %vm492_vm10, %v491_v3, 0  ;;  %v424_v6 = vadd.s32 %v423_v58, %v419_v24  ;;  %vm317_vm11 = vcmp.lt.s32.totalorder %v316_v56, 2  ;;  %vm321_vm13 = vcmp.eq.s32.totalorder %v316_v56, 2 }
  0x67   :  { %v301_v29 = vadd.f32 0.041655596, %v300_v50  ;;  %v308_v41 = vadd.f32 0.008332121, %v307_v8  ;;  %v495_v57 = vand.u32 31, %v493_v36  ;;  %v1000_v61 = vshrl.u32 %v493_v36, 5 }
  0x68   :  { %v425_v51 = vadd.s32 536870912, %v424_v6  ;;  %v489_v13 = vor.u32 8388608, %v488_v60  ;;  %vm318_vm0 = vcmp.eq.s32.totalorder %v316_v56, 0  ;;  %v420_v50 = vadd.s32 %v978_v9, %v976_v27 }
  0x69   :  { %v302_v53 = vmul.f32 %v301_v29, %v299_v34  ;;  %v309_v18 = vmul.f32 %v308_v41, %v299_v34  ;;  %v1002_v63 = vsub.s32 32, %v495_v57  ;;  %v498_v1 = vshll.u32 %v663_v31, %v495_v57 }
  0x6a   :  { %v501_v52 = vshll.u32 %v664_v33, %v495_v57  ;;  %v1006_v38 = vshrl.u32 %v425_v51, 30  ;;  %v504_v28 = vshll.u32 %v665_v35, %v495_v57  ;;  %v507_v14 = vshll.u32 %v666_v37, %v495_v57 }
  0x6b   :  { %v303_v62 = vadd.f32 -0.4999988, %v302_v53  ;;  %v310_v2 = vadd.f32 -0.16666654, %v309_v18  ;;  %v499_v47 = vshrl.u32 %v664_v33, %v1002_v63  ;;  %v502_v42 = vshrl.u32 %v665_v35, %v1002_v63 }
  0x6c   :  { %v505_v11 = vshrl.u32 %v666_v37, %v1002_v63  ;;  %v427_v10 = vshll.u32 %v1006_v38, 30  ;;  %v508_v49 = vshrl.u32 %v667_v39, %v1002_v63  ;;  %vm513_vm14 = vcmp.lt.s32.totalorder %v1000_v61, 1 }
  0x6d   :  { %v304_v15 = vmul.f32 %v303_v62, %v299_v34  ;;  %v311_v19 = vmul.f32 %v310_v2, %v299_v34  ;;  %v1018_v12 = vor.u32 %v499_v47, %v498_v1  ;;  %v1023_v0 = vor.u32 %v502_v42, %v501_v52 }
  0x6e   :  { %v428_v46 = vsub.s32 %v424_v6, %v427_v10  ;;  %v1025_v21 = vor.u32 %v505_v11, %v504_v28  ;;  %v509_v37 = vor.u32 %v508_v49, %v507_v14  ;;  %v510_v20 = vshll.u32 %v667_v39, %v495_v57 }
  0x6f   :  { %v305_v33 = vadd.f32 1.0, %v304_v15  ;;  %v312_v35 = vadd.f32 1.0, %v311_v19  ;;  %v511_v17 = vshrl.u32 %v668_v48, %v1002_v63  ;;  %vm515_vm1 = vcmp.lt.s32.totalorder %v1000_v61, 3 }
  0x70   :  { %vm429_vm15 = vcmp.lt.s32.totalorder %v428_v46, 0  ;;  %v430_v26 = vsub.s32 0, %v428_v46  ;;  %vm516_vm2 = vcmp.lt.s32.totalorder %v1000_v61, 4  ;;  %v1032_v24 = vshll.u32 %v489_v13, 8 }
  0x71   :  { %v313_v25 = vmul.f32 %v312_v35, %v297_v23  ;;  %v322_v32 = vxor.u32 2147483648, %v305_v33  ;;  %v512_v44 = vor.u32 %v511_v17, %v510_v20  ;;  %vm514_vm3 = vcmp.lt.s32.totalorder %v1000_v61, 2 }
  0x72   :  { %v431_v30 = vsel %vm429_vm15, %v430_v26, %v428_v46  ;;  %v521_v48 = vsel %vm513_vm14, %v1018_v12, %v1023_v0  ;;  %v522_v23 = vsel %vm516_vm2, %v509_v37, 920167782  ;;  %v525_v58 = vsel %vm513_vm14, %v1023_v0, %v1025_v21 }
  0x73   :  { %v319_v40 = vxor.u32 2147483648, %v313_v25  ;;  %v323_v43 = vsel %vm321_vm13, %v322_v32, %v313_v25  ;;  %v432_v39 = vclz %v431_v30  ;;  %v523_v34 = vsel %vm515_vm1, %v1025_v21, %v522_v23 }
  0x74   :  { %v524_v8 = vsel %vm514_vm3, %v521_v48, %v523_v34  ;;  %v526_v36 = vsel %vm516_vm2, %v512_v44, 1326507024  ;;  %v530_v29 = vand.u32 65535, %v1032_v24  ;;  %v531_v4 = vshrl.u32 %v1032_v24, 16 }
  0x75   :  { %v320_v45 = vsel %vm318_vm0, %v305_v33, %v319_v40  ;;  %v651_v7 = vadd.s32 4294967294, %v432_v39  ;;  %v527_v9 = vsel %vm515_vm1, %v509_v37, %v526_v36  ;;  %v554_v41 = vand.u32 65535, %v524_v8 }
  0x76   :  { %v324_v3 = vsel %vm317_vm11, %v320_v45, %v323_v43  ;;  %v555_v56 = vshrl.u32 %v524_v8, 16  ;;  %v528_v18 = vsel %vm514_vm3, %v525_v58, %v527_v9  ;;  %vm328_vm5 = vcmp.lt.s32.totalorder %v693_v5, 0 }
  0x77   :  { %v325_v16 = vsel %vm314_vm12, nan, %v324_v3  ;;  %vm652_vm4 = vcmp.lt.s32.totalorder %v651_v7, 0  ;;  %v532_v51 = vand.u32 65535, %v528_v18  ;;  %v533_v52 = vshrl.u32 %v528_v18, 16 }
  0x78   :  { %637 = vst [vmem:[%s1116_s1 + $0x8] sm:$0xff] %v325_v16  ;;  %v435_v27 = vsel %vm652_vm4, 0, %v651_v7  ;;  %v556_v2 = vmul.u32 %v554_v41, %v530_v29  ;;  %v557_v28 = vmul.u32 %v555_v56, %v530_v29  ;;  %v558_v47 = vmul.u32 %v554_v41, %v531_v4 }
  0x79   :  { %v436_v6 = vsub.s32 32, %v435_v27  ;;  %v437_v57 = vshll.u32 %v428_v46, %v435_v27  ;;  %v440_v53 = vsub.s32 4294967266, %v435_v27  ;;  %v536_v62 = vmul.u32 %v532_v51, %v531_v4 }
  0x7a   :  { %vm1070_vm6 = vcmp.le.f32.partialorder %v326_v22, 0.7853982  ;;  %v534_v15 = vmul.u32 %v532_v51, %v530_v29  ;;  %v535_v19 = vmul.u32 %v533_v52, %v530_v29  ;;  %v497_v10 = vshrl.u32 %v663_v31, %v1002_v63 }
  0x7b   :  { %v438_v60 = vshrl.u32 %v420_v50, %v436_v6  ;;  %v441_v1 = vadd.s32 127, %v440_v53  ;;  %v537_v13 = vmul.u32 %v533_v52, %v531_v4  ;;  %v559_v49 = vmul.u32 %v555_v56, %v531_v4 }
  0x7c   :  { %v560_v33 = vshll.u32 %v557_v28, 16  ;;  %v538_v37 = vshll.u32 %v535_v19, 16  ;;  %v540_v20 = vshll.u32 %v536_v62, 16  ;;  %v450_v17 = vsub.s32 4, %v1006_v38 }
  0x7d   :  { %v439_v11 = vor.u32 %v438_v60, %v437_v57  ;;  %v442_v14 = vshll.u32 %v441_v1, 23  ;;  %v518_v22 = vsel %vm516_vm2, %v1025_v21, 2102212464  ;;  %v562_v25 = vshll.u32 %v558_v47, 16 }
  0x7e   :  { %vm564_vm7 = vc.u32 %v556_v2, %v560_v33  ;;  %vm542_vm8 = vc.u32 %v534_v15, %v538_v37  ;;  %v544_v26 = vadd.s32 %v538_v37, %v534_v15  ;;  %v517_v63 = vsel %vm513_vm14, %v497_v10, %v1018_v12 }
  0x7f   :  { %v443_v35 = vor.u32 4788187, %v442_v14  ;;  %v446_v46 = vcvt.s32.f32 %v439_v11  ;;  %v565_v31 = vsel %vm564_vm7, 1, %v669_v54  ;;  %v543_v40 = vsel %vm542_vm8, 1, %v669_v54 }
  0x80   :  { %v566_v43 = vadd.s32 %v560_v33, %v556_v2  ;;  %v567_v30 = vadd.s32 %v565_v31, %v559_v49  ;;  %v539_v39 = vshrl.u32 %v535_v19, 16  ;;  %v545_v48 = vadd.s32 %v543_v40, %v537_v13 }
  0x81   :  { %v444_v32 = vand.u32 2147483647, %v443_v35  ;;  %vm546_vm9 = vc.u32 %v544_v26, %v540_v20  ;;  %v519_v21 = vsel %vm515_vm1, %v1023_v0, %v518_v22  ;;  %v561_v45 = vshrl.u32 %v557_v28, 16 }
  0x82   :  { %v547_v23 = vsel %vm546_vm9, 1, %v669_v54  ;;  %vm568_vm10 = vc.u32 %v566_v43, %v562_v25  ;;  %v541_v3 = vshrl.u32 %v536_v62, 16  ;;  %v563_v16 = vshrl.u32 %v558_v47, 16 }
  0x83   :  { %v447_v44 = vmul.f32 %v446_v46, %v444_v32  ;;  %v549_v7 = vadd.s32 %v547_v23, %v545_v48  ;;  %v569_v12 = vsel %vm568_vm10, 1, %v669_v54  ;;  %v451_v58 = vsel %vm328_vm5, %v450_v17, %v1006_v38 }
  0x84   :  { %v571_v50 = vadd.s32 %v569_v12, %v567_v30  ;;  %v570_v0 = vadd.s32 %v566_v43, %v562_v25  ;;  %v520_v4 = vsel %vm514_vm3, %v517_v63, %v519_v21  ;;  %v453_v41 = vsel %vm1070_vm6, 0, %v451_v58 }
  0x85   :  { %v448_v34 = vxor.u32 2147483648, %v447_v44  ;;  %v550_v36 = vadd.s32 %v549_v7, %v539_v39  ;;  %v574_v38 = vmul.u32 %v1032_v24, %v520_v4  ;;  %v470_v60 = vadd.s32 3, %v453_v41 }
  0x86   :  { %v572_v27 = vadd.s32 %v571_v50, %v561_v45  ;;  %vm469_vm0 = vweird.f32 %v693_v5  ;;  %vm483_vm2 = vcmp.lt.s32.totalorder %v917_v55, 0  ;;  %vm482_vm3 = vcmp.le.f32.partialorder %v481_v59, 0.7853982 }
  0x87   :  { %v449_v8 = vsel %vm328_vm5, %v448_v34, %v447_v44  ;;  %v551_v9 = vadd.s32 %v550_v36, %v541_v3  ;;  %v471_v11 = vand.u32 3, %v470_v60  ;;  %vm624_vm7 = vweird.f32 %v917_v55 }
  0x88   :  { %v452_v29 = vsel %vm1070_vm6, %v693_v5, %v449_v8  ;;  %v573_v56 = vadd.s32 %v572_v27, %v563_v16 }
  0x89   :  { %v454_v54 = vmul.f32 %v452_v29, %v452_v29  ;;  %vm576_vm11 = vc.u32 %v551_v9, %v570_v0  ;;  %vm476_vm12 = vcmp.eq.s32.totalorder %v471_v11, 2  ;;  %vm472_vm13 = vcmp.lt.s32.totalorder %v471_v11, 2 }
  0x8a   :  { %v577_v53 = vadd.s32 1, %v573_v56  ;;  %vm473_vm14 = vcmp.eq.s32.totalorder %v471_v11, 0  ;;  %v575_v31 = vadd.s32 %v570_v0, %v551_v9 }
  0x8b   :  { %v455_v6 = vmul.f32 -0.001358992, %v454_v54  ;;  %v462_v57 = vmul.f32 -0.00019511016, %v454_v54 }
  0x8c   :  { %v578_v1 = vsel %vm576_vm11, %v577_v53, %v573_v56 }
  0x8d   :  { %v456_v18 = vadd.f32 0.041655596, %v455_v6  ;;  %v463_v51 = vadd.f32 0.008332121, %v462_v57  ;;  %v579_v62 = vadd.s32 %v578_v1, %v574_v38 }
  0x8f   :  { %v457_v52 = vmul.f32 %v456_v18, %v454_v54  ;;  %v464_v61 = vmul.f32 %v463_v51, %v454_v54  ;;  %v580_v47 = vadd.s32 536870912, %v579_v62 }
  0x91   :  { %v458_v2 = vadd.f32 -0.4999988, %v457_v52  ;;  %v465_v28 = vadd.f32 -0.16666654, %v464_v61  ;;  %v581_v15 = vshrl.u32 %v580_v47, 30 }
  0x93   :  { %v459_v42 = vmul.f32 %v458_v2, %v454_v54  ;;  %v466_v14 = vmul.f32 %v465_v28, %v454_v54  ;;  %v582_v13 = vshll.u32 %v581_v15, 30  ;;  %v605_v3 = vsub.s32 4, %v581_v15 }
  0x95   :  { %v460_v19 = vadd.f32 1.0, %v459_v42  ;;  %v467_v10 = vadd.f32 1.0, %v466_v14  ;;  %v583_v33 = vsub.s32 %v579_v62, %v582_v13  ;;  %v606_v16 = vsel %vm483_vm2, %v605_v3, %v581_v15 }
  0x96   :  { %v608_v58 = vsel %vm482_vm3, 0, %v606_v16 }
  0x97   :  { %v468_v24 = vmul.f32 %v467_v10, %v452_v29  ;;  %v477_v49 = vxor.u32 2147483648, %v460_v19  ;;  %vm584_vm15 = vcmp.lt.s32.totalorder %v583_v33, 0  ;;  %v585_v37 = vsub.s32 0, %v583_v33 }
  0x98   :  { %v625_v27 = vadd.s32 3, %v608_v58 }
  0x99   :  { %v474_v35 = vxor.u32 2147483648, %v468_v24  ;;  %v478_v46 = vsel %vm476_vm12, %v477_v49, %v468_v24  ;;  %v586_v17 = vsel %vm584_vm15, %v585_v37, %v583_v33 }
  0x9a   :  { %v587_v25 = vclz %v586_v17  ;;  %v626_v6 = vand.u32 3, %v625_v27 }
  0x9b   :  { %v475_v20 = vsel %vm473_vm14, %v460_v19, %v474_v35 }
  0x9c   :  { %v479_v22 = vsel %vm472_vm13, %v475_v20, %v478_v46  ;;  %v654_v26 = vadd.s32 4294967294, %v587_v25  ;;  %vm631_vm4 = vcmp.eq.s32.totalorder %v626_v6, 2  ;;  %vm628_vm5 = vcmp.eq.s32.totalorder %v626_v6, 0 }
  0x9d   :  { %v480_v32 = vsel %vm469_vm0, nan, %v479_v22  ;;  %vm627_vm6 = vcmp.lt.s32.totalorder %v626_v6, 2 }
  0x9e   :  { %638 = vst [vmem:[%s1116_s1 + $0x10] sm:$0xff] %v480_v32  ;;  %vm655_vm1 = vcmp.lt.s32.totalorder %v654_v26, 0 }
  0x9f   :  { %v590_v63 = vsel %vm655_vm1, 0, %v654_v26 }
  0xa0   :  { %v591_v40 = vsub.s32 32, %v590_v63  ;;  %v592_v43 = vshll.u32 %v583_v33, %v590_v63  ;;  %v595_v30 = vsub.s32 4294967266, %v590_v63 }
  0xa2   :  { %v593_v44 = vshrl.u32 %v575_v31, %v591_v40  ;;  %v596_v39 = vadd.s32 127, %v595_v30 }
  0xa4   :  { %v594_v48 = vor.u32 %v593_v44, %v592_v43  ;;  %v597_v5 = vshll.u32 %v596_v39, 23 }
  0xa6   :  { %v598_v21 = vor.u32 4788187, %v597_v5  ;;  %v601_v23 = vcvt.s32.f32 %v594_v48 }
  0xa8   :  { %v599_v45 = vand.u32 2147483647, %v598_v21 }
  0xaa   :  { %v602_v34 = vmul.f32 %v601_v23, %v599_v45 }
  0xac   :  { %v603_v7 = vxor.u32 2147483648, %v602_v34 }
  0xae   :  { %v604_v12 = vsel %vm483_vm2, %v603_v7, %v602_v34 }
  0xaf   :  { %v607_v50 = vsel %vm482_vm3, %v917_v55, %v604_v12 }
  0xb0   :  { %v609_v8 = vmul.f32 %v607_v50, %v607_v50 }
  0xb2   :  { %v610_v36 = vmul.f32 -0.001358992, %v609_v8  ;;  %v617_v0 = vmul.f32 -0.00019511016, %v609_v8 }
  0xb4   :  { %v611_v29 = vadd.f32 0.041655596, %v610_v36  ;;  %v618_v4 = vadd.f32 0.008332121, %v617_v0 }
  0xb6   :  { %v612_v54 = vmul.f32 %v611_v29, %v609_v8  ;;  %v619_v9 = vmul.f32 %v618_v4, %v609_v8 }
  0xb8   :  { %v613_v41 = vadd.f32 -0.4999988, %v612_v54  ;;  %v620_v56 = vadd.f32 -0.16666654, %v619_v9 }
  0xba   :  { %v614_v57 = vmul.f32 %v613_v41, %v609_v8  ;;  %v621_v38 = vmul.f32 %v620_v56, %v609_v8 }
  0xbc   :  { %v615_v59 = vadd.f32 1.0, %v614_v57  ;;  %v622_v53 = vadd.f32 1.0, %v621_v38 }
  0xbe   :  { %v623_v18 = vmul.f32 %v622_v53, %v607_v50  ;;  %v632_v51 = vxor.u32 2147483648, %v615_v59 }
  0xc0   :  { %v629_v60 = vxor.u32 2147483648, %v623_v18  ;;  %v633_v1 = vsel %vm631_vm4, %v632_v51, %v623_v18 }
  0xc2   :  { %v630_v52 = vsel %vm628_vm5, %v615_v59, %v629_v60 }
  0xc3   :  { %v634_v61 = vsel %vm627_vm6, %v630_v52, %v633_v1 }
  0xc4   :  { %v635_v62 = vsel %vm624_vm7, nan, %v634_v61 }
  0xc5   :  { %639 = vst [vmem:[%s1116_s1 + $0x18] sm:$0xff] %v635_v62 }

</bundles_post_ra>
